<compile_context>
chip_gen: v7x
topology: tpu7x:2x2x1
jax: 0.10.0
libtpu: 0.0.40
codegen_flags: <defaults>
</compile_context>

<pallas_src>
import jax
import jax.numpy as jnp
from jax.experimental import pallas as pl
from jax.experimental.pallas import tpu as pltpu

LANE = 128


def _round_up(n, m):
    return ((n + m - 1) // m) * m


# ----------------------------------------------------------------------------
# Kernel: one batch tile; all (small) weights resident in VMEM for the whole
# grid.  bf16 MXU matmuls with f32 accumulation; bias-add / ReLU in f32.
# ----------------------------------------------------------------------------
def model_kernel(x_ref, w1_ref, b1_ref, kg1_ref, bg1_ref, kg2_ref, bg2_ref,
                 w2_ref, b2_ref, w3h_ref, w3x_ref, b3_ref, out_ref):
    x = x_ref[...]                                                    # (TB, Vp) bf16

    # fc_list1 (all targets fused): (TB, Vp) @ (Vp, T*H1)
    f = jnp.dot(x, w1_ref[...], preferred_element_type=jnp.float32) + b1_ref[...]
    f = jnp.maximum(f, 0.0)

    # graph1: feat @ kron(adj^T, Wg1) + bias, ReLU
    f = jnp.dot(f.astype(jnp.bfloat16), kg1_ref[...],
                preferred_element_type=jnp.float32) + bg1_ref[...]
    f = jnp.maximum(f, 0.0)

    # graph2: feat @ kron(adj^T, Wg2) + bias, ReLU
    f = jnp.dot(f.astype(jnp.bfloat16), kg2_ref[...],
                preferred_element_type=jnp.float32) + bg2_ref[...]
    f = jnp.maximum(f, 0.0)

    # fc_list2 (block-diagonal, all targets fused)
    h = jnp.dot(f.astype(jnp.bfloat16), w2_ref[...],
                preferred_element_type=jnp.float32) + b2_ref[...]
    h = jnp.maximum(h, 0.0)

    # fc_list3 on concat([h, x]) split into two matmuls; lane-dense (TB, Np) store.
    out_ref[...] = (jnp.dot(h.astype(jnp.bfloat16), w3h_ref[...],
                            preferred_element_type=jnp.float32)
                    + jnp.dot(x, w3x_ref[...], preferred_element_type=jnp.float32)
                    + b3_ref[...])


# ----------------------------------------------------------------------------
# One-time weight folding (hoisted out of the per-call path).
# ----------------------------------------------------------------------------
def fold_params(params, adj):
    T = adj.shape[0]
    V, H1 = params['w1'].shape[1], params['w1'].shape[2]
    H2 = params['wg1'].shape[1]
    H3 = params['w2'].shape[2]

    Vp = _round_up(V, LANE)            # lane-dense x / W1 / W3x rows
    Np = _round_up(T, LANE)            # lane-dense output columns

    # fc_list1: W1_all[v, t*H1+j] = w1[t, v, j]; pad rows V -> Vp with zeros.
    w1_all = jnp.transpose(params['w1'], (1, 0, 2)).reshape(V, T * H1)
    w1_all = jnp.pad(w1_all, ((0, Vp - V), (0, 0)))
    b1_row = params['b1'].reshape(1, T * H1)

    # GraphConvolution on batch-major (B, T*H) features:
    #   out[b, t*Ho+j] = sum_{s,i} feat[b, s*Hi+i] * adj[t,s] * wg[i,j]
    #   => combined weight = kron(adj^T, wg)
    kg1 = jnp.kron(adj.T, params['wg1'])                 # (T*H1, T*H2)
    bg1_row = jnp.tile(params['bg1'], (1, T))            # (1, T*H2)
    kg2 = jnp.kron(adj.T, params['wg2'])                 # (T*H2, T*H2)
    bg2_row = jnp.tile(params['bg2'], (1, T))            # (1, T*H2)

    # fc_list2: block-diagonal weight (T*H2, T*H3)
    eye_t = jnp.eye(T, dtype=jnp.float32)
    w2_bd = jnp.einsum('st,tij->sitj', eye_t, params['w2']).reshape(T * H2, T * H3)
    b2_row = params['b2'].reshape(1, T * H3)

    # fc_list3: block (T*H3, T) for the h-part, dense (V, T) for the x-part;
    # zero-pad output cols T -> Np and x rows V -> Vp.
    w3h_bd = jnp.einsum('st,sj->sjt', eye_t, params['w3h'][:, :, 0]).reshape(T * H3, T)
    w3h_bd = jnp.pad(w3h_bd, ((0, 0), (0, Np - T)))
    w3x_all = jnp.pad(params['w3x'][:, :, 0].T, ((0, Vp - V), (0, Np - T)))
    b3_row = jnp.pad(params['b3'].reshape(1, T), ((0, 0), (0, Np - T)))

    bf16 = lambda a: a.astype(jnp.bfloat16)
    weights = (bf16(w1_all), b1_row, bf16(kg1), bg1_row, bf16(kg2), bg2_row,
               bf16(w2_bd), b2_row, bf16(w3h_bd), bf16(w3x_all), b3_row)
    return {'weights': weights, 'n_target': T, 'n_variable': V,
            'v_padded': Vp, 'out_padded': Np}


def _pick_batch_tile(B):
    if B <= 16:
        return B                        # single tiny tile (block == full dim)
    if B >= 2048:
        return 1024                     # big tiles amortize per-step overhead
    # medium batch: at least 2 grid steps so both v7x TensorCores get work
    return min(1024, ((-(-B // 2) + 7) // 8) * 8)


# ----------------------------------------------------------------------------
# Forward: pad x to lane-dense bf16, launch a batch-tiled grid, slice output.
# ----------------------------------------------------------------------------
def model_forward(x, folded):
    B, V = x.shape
    T = folded['n_target']
    Vp = folded['v_padded']
    Np = folded['out_padded']
    weights = folded['weights']

    x_p = jnp.pad(x, ((0, 0), (0, Vp - V))).astype(jnp.bfloat16)

    TB = _pick_batch_tile(B)
    grid = (pl.cdiv(B, TB),)

    x_spec = pl.BlockSpec((TB, Vp), lambda i: (i, 0))
    out_spec = pl.BlockSpec((TB, Np), lambda i: (i, 0))
    # Grid-invariant weights: whole-array VMEM residency (no double-buffering).
    w_specs = [pl.BlockSpec(memory_space=pltpu.MemorySpace.VMEM) for _ in weights]

    out = pl.pallas_call(
        model_kernel,
        out_shape=jax.ShapeDtypeStruct((B, Np), jnp.float32),
        grid=grid,
        in_specs=[x_spec] + w_specs,
        out_specs=out_spec,
        compiler_params=pltpu.CompilerParams(
            dimension_semantics=("parallel",)),
    )(x_p, *weights)
    return out[:, :T]


# ----------------------------------------------------------------------------
# Parameter init (PyTorch-style uniform) and pure-JAX f32 reference.
# ----------------------------------------------------------------------------
def init_params(key, V, H1, H2, H3, T):
    ks = jax.random.split(key, 11)

    def u(k, shape, fan):
        bound = 1.0 / (fan ** 0.5)
        return jax.random.uniform(k, shape, jnp.float32, -bound, bound)

    return {
        # fc_list1[i]: Linear(V, H1)
        'w1': u(ks[0], (T, V, H1), V), 'b1': u(ks[1], (T, H1), V),
        # GraphConvolution(H1, H2) / (H2, H2)
        'wg1': u(ks[2], (H1, H2), H2), 'bg1': u(ks[3], (1, H2), H2),
        'wg2': u(ks[4], (H2, H2), H2), 'bg2': u(ks[5], (1, H2), H2),
        # fc_list2[i]: Linear(H2, H3)
        'w2': u(ks[6], (T, H2, H3), H2), 'b2': u(ks[7], (T, H3), H2),
        # fc_list3[i]: Linear(H3 + V, 1) split into the H3-part and the V-part
        'w3h': u(ks[8], (T, H3, 1), H3 + V),
        'w3x': u(ks[9], (T, V, 1), H3 + V),
        'b3': u(ks[10], (T, 1), H3 + V),
    }


def reference_forward(x, adj, p):
    """Pure-JAX f32 replica of the PyTorch forward."""
    T = adj.shape[0]
    feats = [jax.nn.relu(x @ p['w1'][i] + p['b1'][i]) for i in range(T)]
    feat = jnp.stack(feats, axis=1)                       # (B, T, H1)
    s = feat @ p['wg1']
    feat = jax.nn.relu(jnp.einsum('ts,bsh->bth', adj, s) + p['bg1'][0])
    s = feat @ p['wg2']
    feat = jax.nn.relu(jnp.einsum('ts,bsh->bth', adj, s) + p['bg2'][0])
    outs = []
    for i in range(T):
        h = jax.nn.relu(feat[:, i, :] @ p['w2'][i] + p['b2'][i])
        w3 = jnp.concatenate([p['w3h'][i], p['w3x'][i]], axis=0)   # (H3+V, 1)
        o = jnp.concatenate([h, x], axis=1) @ w3 + p['b3'][i]
        outs.append(o[:, 0])
    return jnp.stack(outs, axis=1)                        # (B, T)


if __name__ == "__main__":
    # batch, n_variable, hid1, hid2, hid3, n_target
    B, V, H1, H2, H3, T = 8, 16, 32, 32, 32, 4

    key = jax.random.PRNGKey(0)
    kp, kx, ka = jax.random.split(key, 3)
    params = init_params(kp, V, H1, H2, H3, T)
    x = jax.random.normal(kx, (B, V), jnp.float32)
    adj_raw = jax.random.uniform(ka, (T, T), jnp.float32)
    adj = adj_raw / adj_raw.sum(axis=1, keepdims=True)    # row-normalized adjacency

    # One-time weight folding (hoisted out of the per-call forward path).
    folded = fold_params(params, adj)
    jax.block_until_ready(folded['weights'])

    out = model_forward(x, folded)
    jax.block_until_ready(out)

    ref = reference_forward(x, adj, params)
    assert out.shape == (B, T), out.shape
    # bf16 MXU path: relaxed tolerance vs the f32 reference.
    err = jnp.max(jnp.abs(out - ref))
    assert jnp.allclose(out, ref, atol=5e-2, rtol=5e-2), f"max abs err {err}"
    print("KERNEL_OK")
</pallas_src>

<mosaic_0001>
module attributes {stable_mosaic.version = 11 : i64} {
  func.func @model_kernel(%arg0: i32, %arg1: memref<8x128xbf16, #tpu.memory_space<vmem>>, %arg2: memref<128x128xbf16, #tpu.memory_space<vmem>>, %arg3: memref<1x128xf32, #tpu.memory_space<vmem>>, %arg4: memref<128x128xbf16, #tpu.memory_space<vmem>>, %arg5: memref<1x128xf32, #tpu.memory_space<vmem>>, %arg6: memref<128x128xbf16, #tpu.memory_space<vmem>>, %arg7: memref<1x128xf32, #tpu.memory_space<vmem>>, %arg8: memref<128x128xbf16, #tpu.memory_space<vmem>>, %arg9: memref<1x128xf32, #tpu.memory_space<vmem>>, %arg10: memref<128x128xbf16, #tpu.memory_space<vmem>>, %arg11: memref<128x128xbf16, #tpu.memory_space<vmem>>, %arg12: memref<1x128xf32, #tpu.memory_space<vmem>>, %arg13: memref<8x128xf32, #tpu.memory_space<vmem>>) attributes {dimension_semantics = [#tpu.dimension_semantics<parallel>], iteration_bounds = array<i64: 1>, scalar_prefetch = 0 : i64, scratch_operands = 0 : i64, tpu.core_type = #tpu.core_type<tc>, window_params = [{transform_indices = @transform_0, window_bounds = array<i64: 8, 128>}, {pipeline_mode = #tpu.pipeline_mode<synchronous>, transform_indices = @transform_1, window_bounds = array<i64: 128, 128>}, {pipeline_mode = #tpu.pipeline_mode<synchronous>, transform_indices = @transform_2, window_bounds = array<i64: 1, 128>}, {pipeline_mode = #tpu.pipeline_mode<synchronous>, transform_indices = @transform_3, window_bounds = array<i64: 128, 128>}, {pipeline_mode = #tpu.pipeline_mode<synchronous>, transform_indices = @transform_4, window_bounds = array<i64: 1, 128>}, {pipeline_mode = #tpu.pipeline_mode<synchronous>, transform_indices = @transform_5, window_bounds = array<i64: 128, 128>}, {pipeline_mode = #tpu.pipeline_mode<synchronous>, transform_indices = @transform_6, window_bounds = array<i64: 1, 128>}, {pipeline_mode = #tpu.pipeline_mode<synchronous>, transform_indices = @transform_7, window_bounds = array<i64: 128, 128>}, {pipeline_mode = #tpu.pipeline_mode<synchronous>, transform_indices = @transform_8, window_bounds = array<i64: 1, 128>}, {pipeline_mode = #tpu.pipeline_mode<synchronous>, transform_indices = @transform_9, window_bounds = array<i64: 128, 128>}, {pipeline_mode = #tpu.pipeline_mode<synchronous>, transform_indices = @transform_10, window_bounds = array<i64: 128, 128>}, {pipeline_mode = #tpu.pipeline_mode<synchronous>, transform_indices = @transform_11, window_bounds = array<i64: 1, 128>}, {transform_indices = @transform_12, window_bounds = array<i64: 8, 128>}]} {
    %c0 = arith.constant 0 : index
    %c0_0 = arith.constant 0 : index
    %0 = vector.load %arg1[%c0, %c0_0] : memref<8x128xbf16, #tpu.memory_space<vmem>>, vector<8x128xbf16>
    %c0_1 = arith.constant 0 : index
    %c0_2 = arith.constant 0 : index
    %1 = vector.load %arg2[%c0_1, %c0_2] : memref<128x128xbf16, #tpu.memory_space<vmem>>, vector<128x128xbf16>
    %cst = arith.constant dense<0.000000e+00> : vector<8x128xf32>
    %2 = tpu.matmul %0, %1, %cst {dimension_numbers = #tpu.dot_dimension_numbers<[1], [0], [0], [1], [0, 0, 1, 1], [], []>} : vector<8x128xbf16>, vector<128x128xbf16>, vector<8x128xf32> -> vector<8x128xf32>
    %c0_3 = arith.constant 0 : index
    %c0_4 = arith.constant 0 : index
    %3 = vector.load %arg3[%c0_3, %c0_4] : memref<1x128xf32, #tpu.memory_space<vmem>>, vector<1x128xf32>
    %4 = vector.broadcast %3 : vector<1x128xf32> to vector<8x128xf32>
    %5 = arith.addf %2, %4 : vector<8x128xf32>
    %cst_5 = arith.constant 0.000000e+00 : f32
    %6 = vector.broadcast %cst_5 : f32 to vector<8x128xf32>
    %7 = arith.maximumf %5, %6 : vector<8x128xf32>
    %8 = arith.truncf %7 : vector<8x128xf32> to vector<8x128xbf16>
    %c0_6 = arith.constant 0 : index
    %c0_7 = arith.constant 0 : index
    %9 = vector.load %arg4[%c0_6, %c0_7] : memref<128x128xbf16, #tpu.memory_space<vmem>>, vector<128x128xbf16>
    %cst_8 = arith.constant dense<0.000000e+00> : vector<8x128xf32>
    %10 = tpu.matmul %8, %9, %cst_8 {dimension_numbers = #tpu.dot_dimension_numbers<[1], [0], [0], [1], [0, 0, 1, 1], [], []>} : vector<8x128xbf16>, vector<128x128xbf16>, vector<8x128xf32> -> vector<8x128xf32>
    %c0_9 = arith.constant 0 : index
    %c0_10 = arith.constant 0 : index
    %11 = vector.load %arg5[%c0_9, %c0_10] : memref<1x128xf32, #tpu.memory_space<vmem>>, vector<1x128xf32>
    %12 = vector.broadcast %11 : vector<1x128xf32> to vector<8x128xf32>
    %13 = arith.addf %10, %12 : vector<8x128xf32>
    %cst_11 = arith.constant 0.000000e+00 : f32
    %14 = vector.broadcast %cst_11 : f32 to vector<8x128xf32>
    %15 = arith.maximumf %13, %14 : vector<8x128xf32>
    %16 = arith.truncf %15 : vector<8x128xf32> to vector<8x128xbf16>
    %c0_12 = arith.constant 0 : index
    %c0_13 = arith.constant 0 : index
    %17 = vector.load %arg6[%c0_12, %c0_13] : memref<128x128xbf16, #tpu.memory_space<vmem>>, vector<128x128xbf16>
    %cst_14 = arith.constant dense<0.000000e+00> : vector<8x128xf32>
    %18 = tpu.matmul %16, %17, %cst_14 {dimension_numbers = #tpu.dot_dimension_numbers<[1], [0], [0], [1], [0, 0, 1, 1], [], []>} : vector<8x128xbf16>, vector<128x128xbf16>, vector<8x128xf32> -> vector<8x128xf32>
    %c0_15 = arith.constant 0 : index
    %c0_16 = arith.constant 0 : index
    %19 = vector.load %arg7[%c0_15, %c0_16] : memref<1x128xf32, #tpu.memory_space<vmem>>, vector<1x128xf32>
    %20 = vector.broadcast %19 : vector<1x128xf32> to vector<8x128xf32>
    %21 = arith.addf %18, %20 : vector<8x128xf32>
    %cst_17 = arith.constant 0.000000e+00 : f32
    %22 = vector.broadcast %cst_17 : f32 to vector<8x128xf32>
    %23 = arith.maximumf %21, %22 : vector<8x128xf32>
    %24 = arith.truncf %23 : vector<8x128xf32> to vector<8x128xbf16>
    %c0_18 = arith.constant 0 : index
    %c0_19 = arith.constant 0 : index
    %25 = vector.load %arg8[%c0_18, %c0_19] : memref<128x128xbf16, #tpu.memory_space<vmem>>, vector<128x128xbf16>
    %cst_20 = arith.constant dense<0.000000e+00> : vector<8x128xf32>
    %26 = tpu.matmul %24, %25, %cst_20 {dimension_numbers = #tpu.dot_dimension_numbers<[1], [0], [0], [1], [0, 0, 1, 1], [], []>} : vector<8x128xbf16>, vector<128x128xbf16>, vector<8x128xf32> -> vector<8x128xf32>
    %c0_21 = arith.constant 0 : index
    %c0_22 = arith.constant 0 : index
    %27 = vector.load %arg9[%c0_21, %c0_22] : memref<1x128xf32, #tpu.memory_space<vmem>>, vector<1x128xf32>
    %28 = vector.broadcast %27 : vector<1x128xf32> to vector<8x128xf32>
    %29 = arith.addf %26, %28 : vector<8x128xf32>
    %cst_23 = arith.constant 0.000000e+00 : f32
    %30 = vector.broadcast %cst_23 : f32 to vector<8x128xf32>
    %31 = arith.maximumf %29, %30 : vector<8x128xf32>
    %32 = arith.truncf %31 : vector<8x128xf32> to vector<8x128xbf16>
    %c0_24 = arith.constant 0 : index
    %c0_25 = arith.constant 0 : index
    %33 = vector.load %arg10[%c0_24, %c0_25] : memref<128x128xbf16, #tpu.memory_space<vmem>>, vector<128x128xbf16>
    %cst_26 = arith.constant dense<0.000000e+00> : vector<8x128xf32>
    %34 = tpu.matmul %32, %33, %cst_26 {dimension_numbers = #tpu.dot_dimension_numbers<[1], [0], [0], [1], [0, 0, 1, 1], [], []>} : vector<8x128xbf16>, vector<128x128xbf16>, vector<8x128xf32> -> vector<8x128xf32>
    %c0_27 = arith.constant 0 : index
    %c0_28 = arith.constant 0 : index
    %35 = vector.load %arg11[%c0_27, %c0_28] : memref<128x128xbf16, #tpu.memory_space<vmem>>, vector<128x128xbf16>
    %cst_29 = arith.constant dense<0.000000e+00> : vector<8x128xf32>
    %36 = tpu.matmul %0, %35, %cst_29 {dimension_numbers = #tpu.dot_dimension_numbers<[1], [0], [0], [1], [0, 0, 1, 1], [], []>} : vector<8x128xbf16>, vector<128x128xbf16>, vector<8x128xf32> -> vector<8x128xf32>
    %37 = arith.addf %34, %36 : vector<8x128xf32>
    %c0_30 = arith.constant 0 : index
    %c0_31 = arith.constant 0 : index
    %38 = vector.load %arg12[%c0_30, %c0_31] : memref<1x128xf32, #tpu.memory_space<vmem>>, vector<1x128xf32>
    %39 = vector.broadcast %38 : vector<1x128xf32> to vector<8x128xf32>
    %40 = arith.addf %37, %39 : vector<8x128xf32>
    %c0_32 = arith.constant 0 : index
    %c0_33 = arith.constant 0 : index
    %41 = vector.load %arg13[%c0_32, %c0_33] : memref<8x128xf32, #tpu.memory_space<vmem>>, vector<8x128xf32>
    tpu.vector_store %arg13[%c0_32, %c0_33], %40 {strides = array<i32>} : memref<8x128xf32, #tpu.memory_space<vmem>>, vector<8x128xf32>,
    return
  }
  func.func @transform_0(%arg0: i32) -> (i32, i32) {
    %c0_i32 = arith.constant 0 : i32
    %c0_i32_0 = arith.constant 0 : i32
    return %arg0, %c0_i32 : i32, i32
  }
  func.func @transform_1(%arg0: i32) -> (i32, i32) {
    %c0_i32 = arith.constant 0 : i32
    %c0_i32_0 = arith.constant 0 : i32
    %c0_i32_1 = arith.constant 0 : i32
    return %c0_i32, %c0_i32_0 : i32, i32
  }
  func.func @transform_2(%arg0: i32) -> (i32, i32) {
    %c0_i32 = arith.constant 0 : i32
    %c0_i32_0 = arith.constant 0 : i32
    %c0_i32_1 = arith.constant 0 : i32
    return %c0_i32, %c0_i32_0 : i32, i32
  }
  func.func @transform_3(%arg0: i32) -> (i32, i32) {
    %c0_i32 = arith.constant 0 : i32
    %c0_i32_0 = arith.constant 0 : i32
    %c0_i32_1 = arith.constant 0 : i32
    return %c0_i32, %c0_i32_0 : i32, i32
  }
  func.func @transform_4(%arg0: i32) -> (i32, i32) {
    %c0_i32 = arith.constant 0 : i32
    %c0_i32_0 = arith.constant 0 : i32
    %c0_i32_1 = arith.constant 0 : i32
    return %c0_i32, %c0_i32_0 : i32, i32
  }
  func.func @transform_5(%arg0: i32) -> (i32, i32) {
    %c0_i32 = arith.constant 0 : i32
    %c0_i32_0 = arith.constant 0 : i32
    %c0_i32_1 = arith.constant 0 : i32
    return %c0_i32, %c0_i32_0 : i32, i32
  }
  func.func @transform_6(%arg0: i32) -> (i32, i32) {
    %c0_i32 = arith.constant 0 : i32
    %c0_i32_0 = arith.constant 0 : i32
    %c0_i32_1 = arith.constant 0 : i32
    return %c0_i32, %c0_i32_0 : i32, i32
  }
  func.func @transform_7(%arg0: i32) -> (i32, i32) {
    %c0_i32 = arith.constant 0 : i32
    %c0_i32_0 = arith.constant 0 : i32
    %c0_i32_1 = arith.constant 0 : i32
    return %c0_i32, %c0_i32_0 : i32, i32
  }
  func.func @transform_8(%arg0: i32) -> (i32, i32) {
    %c0_i32 = arith.constant 0 : i32
    %c0_i32_0 = arith.constant 0 : i32
    %c0_i32_1 = arith.constant 0 : i32
    return %c0_i32, %c0_i32_0 : i32, i32
  }
  func.func @transform_9(%arg0: i32) -> (i32, i32) {
    %c0_i32 = arith.constant 0 : i32
    %c0_i32_0 = arith.constant 0 : i32
    %c0_i32_1 = arith.constant 0 : i32
    return %c0_i32, %c0_i32_0 : i32, i32
  }
  func.func @transform_10(%arg0: i32) -> (i32, i32) {
    %c0_i32 = arith.constant 0 : i32
    %c0_i32_0 = arith.constant 0 : i32
    %c0_i32_1 = arith.constant 0 : i32
    return %c0_i32, %c0_i32_0 : i32, i32
  }
  func.func @transform_11(%arg0: i32) -> (i32, i32) {
    %c0_i32 = arith.constant 0 : i32
    %c0_i32_0 = arith.constant 0 : i32
    %c0_i32_1 = arith.constant 0 : i32
    return %c0_i32, %c0_i32_0 : i32, i32
  }
  func.func @transform_12(%arg0: i32) -> (i32, i32) {
    %c0_i32 = arith.constant 0 : i32
    %c0_i32_0 = arith.constant 0 : i32
    return %arg0, %c0_i32 : i32, i32
  }
}

</mosaic_0001>

<bundles_post_ra>
// kernel: tpu_custom_call.1
= control target key start
LH: loop header
LB: loop body
LE: loop exit
PB: predicated region body
PF: predicated region fallthrough
CT: control target
= control target key end

     0   :  { %17 = vsyncpa [#allocation3], 0  ;;  %s1567_s0 = inlined_call_operand.hbm [shape: bf16[8,128], index: 0, kind: input, shape index: {}]   ;;  %s1568_s1 = inlined_call_operand.hbm [shape: bf16[128,128], index: 1, kind: input, shape index: {}]   ;;  %s1569_s2 = inlined_call_operand.vmem [shape: f32[1,128], index: 2, kind: input, shape index: {}]   ;;  %s1570_s3 = inlined_call_operand.hbm [shape: bf16[128,128], index: 3, kind: input, shape index: {}]   ;;  %s1571_s4 = inlined_call_operand.vmem [shape: f32[1,128], index: 4, kind: input, shape index: {}]   ;;  %s1572_s5 = inlined_call_operand.hbm [shape: bf16[128,128], index: 5, kind: input, shape index: {}]   ;;  %s1573_s6 = inlined_call_operand.vmem [shape: f32[1,128], index: 6, kind: input, shape index: {}]   ;;  %s1574_s7 = inlined_call_operand.hbm [shape: bf16[128,128], index: 7, kind: input, shape index: {}]   ;;  %s1575_s8 = inlined_call_operand.vmem [shape: f32[1,128], index: 8, kind: input, shape index: {}]   ;;  %s1576_s9 = inlined_call_operand.hbm [shape: bf16[128,128], index: 9, kind: input, shape index: {}]   ;;  %s1577_s10 = inlined_call_operand.hbm [shape: bf16[128,128], index: 10, kind: input, shape index: {}]   ;;  %s1578_s11 = inlined_call_operand.vmem [shape: f32[1,128], index: 11, kind: input, shape index: {}]   ;;  %s1579_s12 = inlined_call_operand.hbm [shape: f32[8,128], index: 12, kind: output, shape index: {}]  }
   0x1   :  { %18 = vsyncpa [#allocation6], 0 }
   0x2   :  { %19 = vsyncpa [#allocation9], 0 }
   0x3   :  { %20 = vsyncpa [#allocation12], 0 }
   0x4   :  { %21 = vsyncpa [#allocation4], 0  ;;  %s1297_s21 = smov [#allocation5]   ;;  %s1111_s25 = scalar_lea.hbm %s1568_s1, 1024 }
   0x5   :  { %s37_s22 = sshll.u32 %s1297_s21, 4  ;;  %p1112_p0 = scmp.ne.s32.totalorder %s1568_s1, %s1111_s25  ;;  %s38_s22 = int_to_ptr.vmem [resolvable:$true] %s37_s22 }
   0x6   :  { %p1115_p1 = scmp.lt.u32.totalorder %s1111_s25, %s1568_s1 }
   0x8   :  { %p1117_p2 = pnand %p1115_p1, %p1112_p0 }
   0xa   :  { %1120 = shalt.err (!%p1117_p2)
}
   0xb   :  { %s1121_s30 = scalar_lea.vmem %s38_s22, 1024  ;;  %p1126_p4 = scmp.lt.s32.totalorder %s38_s22, %s38_s22 }
   0xc   :  { %p1122_p3 = scmp.ne.s32.totalorder %s38_s22, %s1121_s30  ;;  %p1127_p5 = scmp.lt.s32.totalorder %s1121_s30, %s1121_s30 }
   0xe   :  { %p1128_p6 = por %p1127_p5, %p1126_p4 }
  0x10   :  { %p1129_p7 = pnand %p1128_p6, %p1122_p3 }
  0x12   :  { %1132 = shalt.err (!%p1129_p7)
}
  0x13   :  { %s1298_s13 = smov 64   ;;  %s1299_s14 = smov 4  }
  0x14   :  { %43 = dma.hbm_to_vmem [thread:$0]  %s1568_s1, 1024, %s38_s22, [#allocation6], %s1298_s13, %s1298_s13, %s1299_s14  }
  0x15   :  { %s1300_s17 = smov [#allocation8]   ;;  %s1301_s19 = smov [#allocation11]  }
  0x16   :  { %s65_s18 = sshll.u32 %s1300_s17, 4  ;;  %s93_s20 = sshll.u32 %s1301_s19, 4  ;;  %s66_s18 = int_to_ptr.vmem [resolvable:$true] %s65_s18  ;;  %s94_s20 = int_to_ptr.vmem [resolvable:$true] %s93_s20 }
  0x17   :  { %s1133_s24 = scalar_lea.hbm %s1572_s5, 1024 }
  0x18   :  { %p1134_p8 = scmp.ne.s32.totalorder %s1572_s5, %s1133_s24  ;;  %p1137_p9 = scmp.lt.u32.totalorder %s1133_s24, %s1572_s5 }
  0x1a   :  { %p1139_p10 = pnand %p1137_p9, %p1134_p8 }
  0x1c   :  { %1142 = shalt.err (!%p1139_p10)
}
  0x1d   :  { %s1143_s1 = scalar_lea.vmem %s66_s18, 1024  ;;  %p1148_p12 = scmp.lt.s32.totalorder %s66_s18, %s66_s18 }
  0x1e   :  { %p1144_p11 = scmp.ne.s32.totalorder %s66_s18, %s1143_s1  ;;  %p1149_p13 = scmp.lt.s32.totalorder %s1143_s1, %s1143_s1 }
  0x20   :  { %p1150_p0 = por %p1149_p13, %p1148_p12 }
  0x22   :  { %p1151_p1 = pnand %p1150_p0, %p1144_p11 }
  0x24   :  { %1154 = shalt.err (!%p1151_p1)
}
  0x25   :  { %71 = dma.hbm_to_vmem [thread:$0]  %s1572_s5, 1024, %s66_s18, [#allocation9], %s1298_s13, %s1298_s13, %s1299_s14  }
  0x26   :  { %s1155_s16 = scalar_lea.hbm %s1576_s9, 1024 }
  0x27   :  { %p1156_p2 = scmp.ne.s32.totalorder %s1576_s9, %s1155_s16  ;;  %p1159_p3 = scmp.lt.u32.totalorder %s1155_s16, %s1576_s9 }
  0x29   :  { %p1161_p4 = pnand %p1159_p3, %p1156_p2 }
  0x2b   :  { %1164 = shalt.err (!%p1161_p4)
}
  0x2c   :  { %s1165_s24 = scalar_lea.vmem %s94_s20, 1024  ;;  %p1170_p6 = scmp.lt.s32.totalorder %s94_s20, %s94_s20 }
  0x2d   :  { %p1166_p5 = scmp.ne.s32.totalorder %s94_s20, %s1165_s24  ;;  %p1171_p7 = scmp.lt.s32.totalorder %s1165_s24, %s1165_s24 }
  0x2f   :  { %p1172_p8 = por %p1171_p7, %p1170_p6 }
  0x31   :  { %p1173_p9 = pnand %p1172_p8, %p1166_p5 }
  0x33   :  { %1176 = shalt.err (!%p1173_p9)
}
  0x34   :  { %99 = dma.hbm_to_vmem [thread:$0]  %s1576_s9, 1024, %s94_s20, [#allocation12], %s1298_s13, %s1298_s13, %s1299_s14  }
  0x35   :  { %s1302_s25 = smov [#allocation2]   ;;  %s1303_s27 = smov [#allocation7]  }
  0x36   :  { %s28_s26 = sshll.u32 %s1302_s25, 4  ;;  %s51_s28 = sshll.u32 %s1303_s27, 4  ;;  %s29_s26 = int_to_ptr.vmem [resolvable:$true] %s28_s26  ;;  %s52_s28 = int_to_ptr.vmem [resolvable:$true] %s51_s28 }
  0x37   :  { %s1177_s29 = scalar_lea.hbm %s1567_s0, 64 }
  0x38   :  { %p1178_p10 = scmp.ne.s32.totalorder %s1567_s0, %s1177_s29  ;;  %p1181_p11 = scmp.lt.u32.totalorder %s1177_s29, %s1567_s0 }
  0x3a   :  { %p1183_p12 = pnand %p1181_p11, %p1178_p10 }
  0x3c   :  { %1186 = shalt.err (!%p1183_p12)
}
  0x3d   :  { %s1187_s9 = scalar_lea.vmem %s29_s26, 64  ;;  %p1192_p0 = scmp.lt.s32.totalorder %s29_s26, %s29_s26 }
  0x3e   :  { %p1188_p13 = scmp.ne.s32.totalorder %s29_s26, %s1187_s9  ;;  %p1193_p1 = scmp.lt.s32.totalorder %s1187_s9, %s1187_s9 }
  0x40   :  { %p1194_p2 = por %p1193_p1, %p1192_p0 }
  0x42   :  { %p1195_p3 = pnand %p1194_p2, %p1188_p13 }
  0x44   :  { %1198 = shalt.err (!%p1195_p3)
}
  0x45   :  { %31 = dma.hbm_to_vmem [thread:$0]  %s1567_s0, 64, %s29_s26, [#allocation3]  }
  0x46   :  { %s1199_s24 = scalar_lea.hbm %s1570_s3, 1024 }
  0x47   :  { %p1200_p4 = scmp.ne.s32.totalorder %s1570_s3, %s1199_s24  ;;  %p1203_p5 = scmp.lt.u32.totalorder %s1199_s24, %s1570_s3 }
  0x49   :  { %p1205_p6 = pnand %p1203_p5, %p1200_p4 }
  0x4b   :  { %1208 = shalt.err (!%p1205_p6)
}
  0x4c   :  { %s1209_s1 = scalar_lea.vmem %s52_s28, 1024  ;;  %p1214_p8 = scmp.lt.s32.totalorder %s52_s28, %s52_s28 }
  0x4d   :  { %p1210_p7 = scmp.ne.s32.totalorder %s52_s28, %s1209_s1  ;;  %p1215_p9 = scmp.lt.s32.totalorder %s1209_s1, %s1209_s1 }
  0x4f   :  { %p1216_p10 = por %p1215_p9, %p1214_p8 }
  0x51   :  { %p1217_p11 = pnand %p1216_p10, %p1210_p7 }
  0x53   :  { %1220 = shalt.err (!%p1217_p11)
}
  0x54   :  { %57 = dma.hbm_to_vmem [thread:$0]  %s1570_s3, 1024, %s52_s28, [#allocation6], %s1298_s13, %s1298_s13, %s1299_s14  }
  0x55   :  { %s1304_s22 = smov [#allocation10]   ;;  %s1305_s30 = smov [#allocation13]  }
  0x56   :  { %s79_s29 = sshll.u32 %s1304_s22, 4  ;;  %s105_s15 = sshll.u32 %s1305_s30, 4  ;;  %s80_s29 = int_to_ptr.vmem [resolvable:$true] %s79_s29  ;;  %s106_s15 = int_to_ptr.vmem [resolvable:$true] %s105_s15 }
  0x57   :  { %s1221_s9 = scalar_lea.hbm %s1574_s7, 1024 }
  0x58   :  { %p1222_p12 = scmp.ne.s32.totalorder %s1574_s7, %s1221_s9  ;;  %p1225_p13 = scmp.lt.u32.totalorder %s1221_s9, %s1574_s7 }
  0x5a   :  { %p1227_p0 = pnand %p1225_p13, %p1222_p12 }
  0x5c   :  { %1230 = shalt.err (!%p1227_p0)
}
  0x5d   :  { %s1231_s3 = scalar_lea.vmem %s80_s29, 1024  ;;  %p1236_p2 = scmp.lt.s32.totalorder %s80_s29, %s80_s29 }
  0x5e   :  { %p1232_p1 = scmp.ne.s32.totalorder %s80_s29, %s1231_s3  ;;  %p1237_p3 = scmp.lt.s32.totalorder %s1231_s3, %s1231_s3 }
  0x60   :  { %p1238_p4 = por %p1237_p3, %p1236_p2 }
  0x62   :  { %p1239_p5 = pnand %p1238_p4, %p1232_p1 }
  0x64   :  { %1242 = shalt.err (!%p1239_p5)
}
  0x65   :  { %85 = dma.hbm_to_vmem [thread:$0]  %s1574_s7, 1024, %s80_s29, [#allocation9], %s1298_s13, %s1298_s13, %s1299_s14  }
  0x66   :  { %s1243_s25 = scalar_lea.hbm %s1577_s10, 1024 }
  0x67   :  { %p1244_p6 = scmp.ne.s32.totalorder %s1577_s10, %s1243_s25  ;;  %p1247_p7 = scmp.lt.u32.totalorder %s1243_s25, %s1577_s10 }
  0x69   :  { %p1249_p8 = pnand %p1247_p7, %p1244_p6 }
  0x6b   :  { %1252 = shalt.err (!%p1249_p8)
}
  0x6c   :  { %s1253_s22 = scalar_lea.vmem %s106_s15, 1024  ;;  %p1258_p10 = scmp.lt.s32.totalorder %s106_s15, %s106_s15 }
  0x6d   :  { %p1254_p9 = scmp.ne.s32.totalorder %s106_s15, %s1253_s22  ;;  %p1259_p11 = scmp.lt.s32.totalorder %s1253_s22, %s1253_s22 }
  0x6f   :  { %p1260_p12 = por %p1259_p11, %p1258_p10 }
  0x71   :  { %p1261_p13 = pnand %p1260_p12, %p1254_p9 }
  0x73   :  { %1264 = shalt.err (!%p1261_p13)
}
  0x74   :  { %111 = dma.hbm_to_vmem [thread:$0]  %s1577_s10, 1024, %s106_s15, [#allocation12], %s1298_s13, %s1298_s13, %s1299_s14  }
  0x75   :  { %1287 = dma.done.wait [#allocation3], 64  }
  0x76   :  { %1288 = vsyncadd [#allocation3], 4294967232 }
  0x77   :  { %1289 = dma.done.wait [#allocation6], 2048  }
  0x78   :  { %1290 = vsyncadd [#allocation6], 4294965248 }
  0x79   :  { %1291 = dma.done.wait [#allocation9], 2048  }
  0x7a   :  { %1292 = vsyncadd [#allocation9], 4294965248 }
  0x7b   :  { %1293 = dma.done.wait [#allocation12], 2048  }
  0x7c   :  { %1294 = vsyncadd [#allocation12], 4294965248  ;;  %v1306_v0 = vmov 0.0   ;;  %vm1307_vm0 = vmmov 0   ;;  %v1063_v1 = vld [vmem:[#allocation5] sm:$0xff]   ;;  %v1064_v2 = vld [vmem:[#allocation5 + $0x8] sm:$0xff]  }
  0x7d   :  { %931 = vmatprep.subr.bf16.mxu0 %v1306_v0  ;;  %947 = vmatprep.mubr.msk.bf16.mxu0 %vm1307_vm0, %v1306_v0  ;;  %v1065_v3 = vld [vmem:[#allocation5 + $0x10] sm:$0xff]   ;;  %v1071_v4 = vld [vmem:[#allocation7] sm:$0xff]   ;;  %v1066_v5 = vld [vmem:[#allocation5 + $0x18] sm:$0xff]   ;;  %s1308_s9 = smov [#allocation14]  }
  0x7e   :  { %951 = vmatprep.subr.bf16.mxu1 %v1306_v0  ;;  %967 = vmatprep.mubr.msk.bf16.mxu1 %vm1307_vm0, %v1306_v0  ;;  %v1072_v6 = vld [vmem:[#allocation7 + $0x8] sm:$0xff]   ;;  %v1067_v7 = vld [vmem:[#allocation5 + $0x20] sm:$0xff]   ;;  %v1073_v8 = vld [vmem:[#allocation7 + $0x10] sm:$0xff]   ;;  %s812_s20 = sshll.u32 %s1308_s9, 4  ;;  %s813_s20 = int_to_ptr.vmem [resolvable:$true] %s812_s20 }
  0x7f   :  { %932 = vmatpush3.bf16.msra.mxu0 %v1063_v1  ;;  %952 = vmatpush3.bf16.msra.mxu1 %v1071_v4  ;;  %v1068_v9 = vld [vmem:[#allocation5 + $0x28] sm:$0xff]   ;;  %v1074_v10 = vld [vmem:[#allocation7 + $0x18] sm:$0xff]   ;;  %v1069_v11 = vld [vmem:[#allocation5 + $0x30] sm:$0xff]   ;;  %p1270_p1 = scmp.lt.s32.totalorder %s813_s20, %s813_s20 }
  0x80   :  { %933 = vmatprep.subr.bf16.mxu0 %v1306_v0  ;;  %953 = vmatprep.subr.bf16.mxu1 %v1306_v0  ;;  %v1075_v12 = vld [vmem:[#allocation7 + $0x20] sm:$0xff]   ;;  %v1070_v13 = vld [vmem:[#allocation5 + $0x38] sm:$0xff]   ;;  %v1076_v14 = vld [vmem:[#allocation7 + $0x28] sm:$0xff]  }
  0x81   :  { %v1493_v15 = vld [vmem:[#allocation2] sm:$0xf]  ;;  %v1077_v16 = vld [vmem:[#allocation7 + $0x30] sm:$0xff]   ;;  %v1079_v18 = vld [vmem:[#allocation8] sm:$0xff]  }
  0x82   :  { %v1078_v17 = vld [vmem:[#allocation7 + $0x38] sm:$0xff]   ;;  %v1080_v19 = vld [vmem:[#allocation8 + $0x8] sm:$0xff]   ;;  %v1081_v20 = vld [vmem:[#allocation8 + $0x10] sm:$0xff]  }
  0x83   :  { %934 = vmatpush3.bf16.msra.mxu0 %v1064_v2  ;;  %954 = vmatpush3.bf16.msra.mxu1 %v1072_v6  ;;  %v1082_v21 = vld [vmem:[#allocation8 + $0x18] sm:$0xff]   ;;  %v1083_v22 = vld [vmem:[#allocation8 + $0x20] sm:$0xff]   ;;  %v1084_v23 = vld [vmem:[#allocation8 + $0x28] sm:$0xff]  }
  0x84   :  { %935 = vmatprep.subr.bf16.mxu0 %v1306_v0  ;;  %955 = vmatprep.subr.bf16.mxu1 %v1306_v0  ;;  %v824_v24 = vld [vmem:[%s1569_s2] ss:$0 sm:$0xff]  ;;  %v1085_v32 = vld [vmem:[#allocation8 + $0x30] sm:$0xff]   ;;  %v1087_v34 = vld [vmem:[#allocation10] sm:$0xff]  }
  0x85   :  { %v1086_v33 = vld [vmem:[#allocation8 + $0x38] sm:$0xff]   ;;  %v1088_v35 = vld [vmem:[#allocation10 + $0x8] sm:$0xff]   ;;  %v1089_v36 = vld [vmem:[#allocation10 + $0x10] sm:$0xff]  }
  0x86   :  { %v1090_v37 = vld [vmem:[#allocation10 + $0x18] sm:$0xff]   ;;  %v1091_v38 = vld [vmem:[#allocation10 + $0x20] sm:$0xff]   ;;  %v1092_v39 = vld [vmem:[#allocation10 + $0x28] sm:$0xff]  }
  0x87   :  { %936 = vmatpush3.bf16.msra.mxu0 %v1065_v3  ;;  %956 = vmatpush3.bf16.msra.mxu1 %v1073_v8  ;;  %v833_v40 = vld [vmem:[%s1571_s4] ss:$0 sm:$0xff]  ;;  %v1093_v48 = vld [vmem:[#allocation10 + $0x30] sm:$0xff]   ;;  %v1095_v50 = vld [vmem:[#allocation13] sm:$0xff]  }
  0x88   :  { %937 = vmatprep.subr.bf16.mxu0 %v1306_v0  ;;  %957 = vmatprep.subr.bf16.mxu1 %v1306_v0  ;;  %v1094_v49 = vld [vmem:[#allocation10 + $0x38] sm:$0xff]   ;;  %v1097_v51 = vld [vmem:[#allocation13 + $0x8] sm:$0xff]   ;;  %v1099_v52 = vld [vmem:[#allocation13 + $0x10] sm:$0xff]  }
  0x89   :  { %v1101_v53 = vld [vmem:[#allocation13 + $0x18] sm:$0xff]   ;;  %v1103_v54 = vld [vmem:[#allocation13 + $0x20] sm:$0xff]   ;;  %v1105_v55 = vld [vmem:[#allocation13 + $0x28] sm:$0xff]  }
  0x8a   :  { %v1107_v56 = vld [vmem:[#allocation13 + $0x30] sm:$0xff]   ;;  %v842_v57 = vld [vmem:[%s1573_s6] ss:$0 sm:$0xff]  ;;  %v1096_v1 = vld [vmem:[#allocation11] sm:$0xff]  }
  0x8b   :  { %938 = vmatpush3.bf16.msra.mxu0 %v1066_v5  ;;  %958 = vmatpush3.bf16.msra.mxu1 %v1074_v10  ;;  %v1098_v3 = vld [vmem:[#allocation11 + $0x8] sm:$0xff]   ;;  %v1100_v4 = vld [vmem:[#allocation11 + $0x10] sm:$0xff]   ;;  %v1102_v5 = vld [vmem:[#allocation11 + $0x18] sm:$0xff]  }
  0x8c   :  { %939 = vmatprep.subr.bf16.mxu0 %v1306_v0  ;;  %959 = vmatprep.subr.bf16.mxu1 %v1306_v0  ;;  %v1104_v6 = vld [vmem:[#allocation11 + $0x20] sm:$0xff]   ;;  %v1108_v8 = vld [vmem:[#allocation11 + $0x30] sm:$0xff]   ;;  %v1110_v10 = vld [vmem:[#allocation11 + $0x38] sm:$0xff]  }
  0x8f   :  { %940 = vmatpush3.bf16.msra.mxu0 %v1067_v7  ;;  %960 = vmatpush3.bf16.msra.mxu1 %v1075_v12  ;;  %v1106_v7 = vld [vmem:[#allocation11 + $0x28] sm:$0xff]  }
  0x90   :  { %941 = vmatprep.subr.bf16.mxu0 %v1306_v0  ;;  %961 = vmatprep.subr.bf16.mxu1 %v1306_v0 }
  0x93   :  { %942 = vmatpush3.bf16.msra.mxu0 %v1068_v9  ;;  %962 = vmatpush3.bf16.msra.mxu1 %v1076_v14  ;;  %v1109_v9 = vld [vmem:[#allocation13 + $0x38] sm:$0xff]  }
  0x94   :  { %943 = vmatprep.subr.bf16.mxu0 %v1306_v0  ;;  %963 = vmatprep.subr.bf16.mxu1 %v1306_v0 }
  0x97   :  { %944 = vmatpush3.bf16.msra.mxu0 %v1069_v11  ;;  %964 = vmatpush3.bf16.msra.mxu1 %v1077_v16  ;;  %v851_v11 = vld [vmem:[%s1575_s8] ss:$0 sm:$0xff]  ;;  %s1265_s8 = scalar_lea.vmem %s813_s20, 128 }
  0x98   :  { %945 = vmatprep.subr.bf16.mxu0 %v1306_v0  ;;  %965 = vmatprep.subr.bf16.mxu1 %v1306_v0  ;;  %p1266_p0 = scmp.ne.s32.totalorder %s813_s20, %s1265_s8  ;;  %p1271_p2 = scmp.lt.s32.totalorder %s1265_s8, %s1265_s8 }
  0x9a   :  { %p1272_p3 = por %p1271_p2, %p1270_p1 }
  0x9b   :  { %946 = vmatpush3.bf16.msra.mxu0 %v1070_v13  ;;  %966 = vmatpush3.bf16.msra.mxu1 %v1078_v17 }
  0x9c   :  { %971 = vmatprep.subr.bf16.mxu0 %v1306_v0  ;;  %991 = vmatprep.subr.bf16.mxu1 %v1306_v0  ;;  %p1273_p4 = pnand %p1272_p3, %p1266_p0 }
  0x9e   :  { %948 = vmatmul.mubr.bf16.vlgmr.msra.gmra.mrb[0].mxu0 %v1493_v15 }
  0x9f   :  { %987 = vmatprep.mubr.msk.bf16.mxu0 %vm1307_vm0, %v1306_v0  ;;  %972 = vmatpush3.bf16.msra.mxu0 %v1079_v18 }
  0xa0   :  { %973 = vmatprep.subr.bf16.mxu0 %v1306_v0 }
  0xa3   :  { %974 = vmatpush3.bf16.msra.mxu0 %v1080_v19 }
  0xa4   :  { %975 = vmatprep.subr.bf16.mxu0 %v1306_v0 }
  0xa7   :  { %976 = vmatpush3.bf16.msra.mxu0 %v1081_v20 }
  0xa8   :  { %977 = vmatprep.subr.bf16.mxu0 %v1306_v0 }
  0xab   :  { %978 = vmatpush3.bf16.msra.mxu0 %v1082_v21 }
  0xac   :  { %979 = vmatprep.subr.bf16.mxu0 %v1306_v0 }
  0xaf   :  { %980 = vmatpush3.bf16.msra.mxu0 %v1083_v22 }
  0xb0   :  { %981 = vmatprep.subr.bf16.mxu0 %v1306_v0 }
  0xb3   :  { %982 = vmatpush3.bf16.msra.mxu0 %v1084_v23 }
  0xb4   :  { %983 = vmatprep.subr.bf16.mxu0 %v1306_v0 }
  0xb7   :  { %984 = vmatpush3.bf16.msra.mxu0 %v1085_v32 }
  0xb8   :  { %985 = vmatprep.subr.bf16.mxu0 %v1306_v0 }
  0xbb   :  { %986 = vmatpush3.bf16.msra.mxu0 %v1086_v33 }
  0xbc   :  { %1011 = vmatprep.subr.bf16.mxu0 %v1306_v0 }
 0x171   :  { %v242_v25 = vpop.f32.mrb[0].mxu0 }
 0x172   :  { %v243_v26 = vadd.f32 %v824_v24, %v242_v25  ;;  %v949_v27 = vpop.f32.mrb[1].mxu0 }
 0x173   :  { %v245_v28 = vpop.f32.mrb[2].mxu0 }
 0x174   :  { %v248_v29 = vmax.f32 %v243_v26, 0.0  ;;  %v950_v30 = vpop.f32.mrb[3].mxu0 }
 0x176   :  { %v249_v31 = vpack.c.bf16 %v248_v29, %v248_v29 }
 0x178   :  { %968 = vmatmul.mubr.bf16.vlgmr.msra.gmra.mrb[0].mxu1 %v249_v31 }
 0x179   :  { %1007 = vmatprep.mubr.msk.bf16.mxu1 %vm1307_vm0, %v1306_v0  ;;  %992 = vmatpush3.bf16.msra.mxu1 %v1087_v34 }
 0x17a   :  { %993 = vmatprep.subr.bf16.mxu1 %v1306_v0 }
 0x17d   :  { %994 = vmatpush3.bf16.msra.mxu1 %v1088_v35 }
 0x17e   :  { %995 = vmatprep.subr.bf16.mxu1 %v1306_v0 }
 0x181   :  { %996 = vmatpush3.bf16.msra.mxu1 %v1089_v36 }
 0x182   :  { %997 = vmatprep.subr.bf16.mxu1 %v1306_v0 }
 0x185   :  { %998 = vmatpush3.bf16.msra.mxu1 %v1090_v37 }
 0x186   :  { %999 = vmatprep.subr.bf16.mxu1 %v1306_v0 }
 0x189   :  { %1000 = vmatpush3.bf16.msra.mxu1 %v1091_v38 }
 0x18a   :  { %1001 = vmatprep.subr.bf16.mxu1 %v1306_v0 }
 0x18d   :  { %1002 = vmatpush3.bf16.msra.mxu1 %v1092_v39 }
 0x18e   :  { %1003 = vmatprep.subr.bf16.mxu1 %v1306_v0 }
 0x191   :  { %1004 = vmatpush3.bf16.msra.mxu1 %v1093_v48 }
 0x192   :  { %1005 = vmatprep.subr.bf16.mxu1 %v1306_v0 }
 0x195   :  { %1006 = vmatpush3.bf16.msra.mxu1 %v1094_v49 }
 0x196   :  { %1031 = vmatprep.subr.bf16.mxu1 %v1306_v0 }
 0x24b   :  { %v355_v41 = vpop.f32.mrb[0].mxu1 }
 0x24c   :  { %v356_v42 = vadd.f32 %v833_v40, %v355_v41  ;;  %v969_v43 = vpop.f32.mrb[1].mxu1 }
 0x24d   :  { %v358_v44 = vpop.f32.mrb[2].mxu1 }
 0x24e   :  { %v361_v45 = vmax.f32 %v356_v42, 0.0  ;;  %v970_v46 = vpop.f32.mrb[3].mxu1 }
 0x250   :  { %v362_v47 = vpack.c.bf16 %v361_v45, %v361_v45 }
 0x252   :  { %988 = vmatmul.mubr.bf16.vlgmr.msra.gmra.mrb[4].mxu0 %v362_v47 }
 0x253   :  { %1027 = vmatprep.mubr.msk.bf16.mxu0 %vm1307_vm0, %v1306_v0  ;;  %1012 = vmatpush3.bf16.msra.mxu0 %v1095_v50 }
 0x254   :  { %1013 = vmatprep.subr.bf16.mxu0 %v1306_v0 }
 0x257   :  { %1014 = vmatpush3.bf16.msra.mxu0 %v1097_v51 }
 0x258   :  { %1015 = vmatprep.subr.bf16.mxu0 %v1306_v0 }
 0x25b   :  { %1016 = vmatpush3.bf16.msra.mxu0 %v1099_v52 }
 0x25c   :  { %1017 = vmatprep.subr.bf16.mxu0 %v1306_v0 }
 0x25f   :  { %1018 = vmatpush3.bf16.msra.mxu0 %v1101_v53 }
 0x260   :  { %1019 = vmatprep.subr.bf16.mxu0 %v1306_v0 }
 0x263   :  { %1020 = vmatpush3.bf16.msra.mxu0 %v1103_v54 }
 0x264   :  { %1021 = vmatprep.subr.bf16.mxu0 %v1306_v0 }
 0x267   :  { %1022 = vmatpush3.bf16.msra.mxu0 %v1105_v55 }
 0x268   :  { %1023 = vmatprep.subr.bf16.mxu0 %v1306_v0 }
 0x26b   :  { %1024 = vmatpush3.bf16.msra.mxu0 %v1107_v56 }
 0x26c   :  { %1025 = vmatprep.subr.bf16.mxu0 %v1306_v0 }
 0x26f   :  { %1026 = vmatpush3.bf16.msra.mxu0 %v1109_v9 }
 0x272   :  { %1028 = vmatmul.mubr.bf16.vlgmr.msra.gmra.mrb[8].mxu0 %v1493_v15  ;;  %v876_v15 = vld [vmem:[%s1578_s11] ss:$0 sm:$0xff] }
 0x325   :  { %v468_v58 = vpop.f32.mrb[4].mxu0 }
 0x326   :  { %v469_v59 = vadd.f32 %v842_v57, %v468_v58  ;;  %v989_v60 = vpop.f32.mrb[5].mxu0 }
 0x327   :  { %v471_v61 = vpop.f32.mrb[6].mxu0 }
 0x328   :  { %v474_v62 = vmax.f32 %v469_v59, 0.0  ;;  %v990_v63 = vpop.f32.mrb[7].mxu0 }
 0x32a   :  { %v475_v2 = vpack.c.bf16 %v474_v62, %v474_v62 }
 0x32c   :  { %1008 = vmatmul.mubr.bf16.vlgmr.msra.gmra.mrb[4].mxu1 %v475_v2 }
 0x32d   :  { %1032 = vmatpush3.bf16.msra.mxu1 %v1096_v1  ;;  %1047 = vmatprep.mubr.msk.bf16.mxu1 %vm1307_vm0, %v1306_v0 }
 0x32e   :  { %1033 = vmatprep.subr.bf16.mxu1 %v1306_v0 }
 0x331   :  { %1034 = vmatpush3.bf16.msra.mxu1 %v1098_v3 }
 0x332   :  { %1035 = vmatprep.subr.bf16.mxu1 %v1306_v0 }
 0x335   :  { %1036 = vmatpush3.bf16.msra.mxu1 %v1100_v4 }
 0x336   :  { %1037 = vmatprep.subr.bf16.mxu1 %v1306_v0 }
 0x339   :  { %1038 = vmatpush3.bf16.msra.mxu1 %v1102_v5 }
 0x33a   :  { %1039 = vmatprep.subr.bf16.mxu1 %v1306_v0 }
 0x33d   :  { %1040 = vmatpush3.bf16.msra.mxu1 %v1104_v6 }
 0x33e   :  { %1041 = vmatprep.subr.bf16.mxu1 %v1306_v0 }
 0x341   :  { %1042 = vmatpush3.bf16.msra.mxu1 %v1106_v7 }
 0x342   :  { %1043 = vmatprep.subr.bf16.mxu1 %v1306_v0 }
 0x345   :  { %1044 = vmatpush3.bf16.msra.mxu1 %v1108_v8  ;;  %v703_v20 = vpop.f32.mrb[8].mxu0 }
 0x346   :  { %1045 = vmatprep.subr.bf16.mxu1 %v1306_v0  ;;  %v1029_v21 = vpop.f32.mrb[9].mxu0 }
 0x347   :  { %v706_v22 = vpop.f32.mrb[10].mxu0 }
 0x348   :  { %v1030_v0 = vpop.f32.mrb[11].mxu0 }
 0x349   :  { %1046 = vmatpush3.bf16.msra.mxu1 %v1110_v10 }
 0x3ff   :  { %v581_v12 = vpop.f32.mrb[4].mxu1 }
 0x400   :  { %v582_v13 = vadd.f32 %v851_v11, %v581_v12  ;;  %v1009_v14 = vpop.f32.mrb[5].mxu1 }
 0x401   :  { %v584_v16 = vpop.f32.mrb[6].mxu1 }
 0x402   :  { %v587_v17 = vmax.f32 %v582_v13, 0.0  ;;  %v1010_v18 = vpop.f32.mrb[7].mxu1 }
 0x404   :  { %v588_v19 = vpack.c.bf16 %v587_v17, %v587_v17 }
 0x406   :  { %1048 = vmatmul.mubr.bf16.vlgmr.msra.gmra.mrb[8].mxu1 %v588_v19 }
 0x4d9   :  { %v791_v23 = vpop.f32.mrb[8].mxu1 }
 0x4da   :  { %v792_v24 = vadd.f32 %v791_v23, %v703_v20  ;;  %v1049_v25 = vpop.f32.mrb[9].mxu1 }
 0x4db   :  { %v794_v26 = vpop.f32.mrb[10].mxu1 }
 0x4dc   :  { %v804_v27 = vadd.f32 %v876_v15, %v792_v24  ;;  %v1050_v28 = vpop.f32.mrb[11].mxu1 }
 0x4de   :  { %805 = vst [vmem:[#allocation14] sm:$0xff] %v804_v27 }
 0x4df   :  { %1276 = shalt.err (!%p1273_p4)
}
 0x4e0   :  { %s1277_s11 = scalar_lea.hbm %s1579_s12, 128 }
 0x4e1   :  { %p1278_p5 = scmp.ne.s32.totalorder %s1579_s12, %s1277_s11  ;;  %p1281_p6 = scmp.lt.u32.totalorder %s1277_s11, %s1579_s12 }
 0x4e3   :  { %p1283_p7 = pnand %p1281_p6, %p1278_p5 }
 0x4e5   :  { %1286 = shalt.err (!%p1283_p7)
}
 0x4e6   :  { %815 = dma.vmem_to_hbm [thread:$0]  %s813_s20, 128, %s1579_s12, [#allocation4]  }
 0x4e7   :  { %1295 = dma.done.wait [#allocation4], 128  }
 0x4e8   :  { %1296 = vsyncadd [#allocation4], 4294967168 }
 0x4e9   :  { %819 = vsyncpa [#allocation3], 1 }
 0x4ea   :  { %820 = vsyncpa [#allocation6], 1 }
 0x4eb   :  { %821 = vsyncpa [#allocation9], 1 }
 0x4ec   :  { %822 = vsyncpa [#allocation12], 1 }
 0x4ed   :  { %823 = vsyncpa [#allocation4], 1 }

</bundles_post_ra>
